<compile_context>
chip_gen: v5e
topology: v5e:2x2
jax: 0.10.0
libtpu: 0.0.40
codegen_flags: <defaults>
</compile_context>

<pallas_src>
import functools

import jax
import jax.numpy as jnp
from jax.experimental import pallas as pl
from jax.experimental.pallas import tpu as pltpu


def _postprocess_kernel(logits_ref, boxes_ref, scale_ref,
                        scores_ref, boxes_out_ref, *,
                        referred_sigmoid, num_classes):
    """One grid step over lane-dense planes.

    logits_ref   : (Bb, C, TNb)  class planes, (t n) lane order
    boxes_ref    : (Bb, 4, TNb)  cx / cy / w / h planes
    scale_ref    : (Bb, 2, 1)    per-batch (img_w, img_h)
    scores_ref   : (Bb, 1, TNb)
    boxes_out_ref: (Bb, 4, TNb)  x0 / y0 / x1 / y1 planes
    """
    logits = logits_ref[...].astype(jnp.float32)

    if referred_sigmoid:
        # sigmoid(l1) = 1 / (1 + exp(-l1))  (exp + approx recip both on EUP)
        scores = pl.reciprocal(1.0 + jnp.exp(-logits[:, 1:2, :]), approx=True)
    elif num_classes == 2:
        # softmax(l)[..., 1] == sigmoid(l1 - l0) == 1 / (1 + exp(l0 - l1))
        scores = pl.reciprocal(
            1.0 + jnp.exp(logits[:, 0:1, :] - logits[:, 1:2, :]), approx=True)
    else:
        m = jnp.max(logits, axis=1, keepdims=True)
        e = jnp.exp(logits - m)
        scores = e[:, 1:2, :] * pl.reciprocal(
            jnp.sum(e, axis=1, keepdims=True), approx=True)
    scores_ref[...] = scores.astype(scores_ref.dtype)

    # boxes: cxcywh -> xyxy scaled by (img_w, img_h); paired 2-sublane math,
    # two direct stores (no concat / XLU repack, no 1-sublane strips).
    boxes = boxes_ref[...].astype(jnp.float32)            # (Bb, 4, TNb)
    scale = scale_ref[...].astype(jnp.float32)            # (Bb, 2, 1) = [w, h]
    ctr = boxes[:, 0:2, :]                                 # (cx, cy)
    half = boxes[:, 2:4, :] * 0.5                          # (w/2, h/2)
    boxes_out_ref[:, 0:2, :] = ((ctr - half) * scale).astype(boxes_out_ref.dtype)
    boxes_out_ref[:, 2:4, :] = ((ctr + half) * scale).astype(boxes_out_ref.dtype)


def _round_up(x, m):
    return (x + m - 1) // m * m


def _tensorcores_per_chip():
    # v7x has 2 TensorCores per chip; v5e / v6e have 1.  Best-effort detect.
    try:
        kind = jax.devices()[0].device_kind.lower()
        if "v7" in kind:
            return 2
    except Exception:
        pass
    return 1


@functools.partial(jax.jit, static_argnames=("referred_sigmoid",))
def base_post_process(pred_is_referred, pred_boxes, orig_sample_sizes,
                      referred_sigmoid=False):
    """JAX/Pallas equivalent of BasePostProcess.forward (stacked outputs).

    pred_is_referred : (T, B, N, C)
    pred_boxes       : (T, B, N, 4)   normalized cxcywh
    orig_sample_sizes: (B, 2)         (img_w, img_h)  [module's unbind(1) order]
    Returns (scores (B, N, T), boxes (B, N, T, 4)).
    """
    T, B, N, C = pred_is_referred.shape
    TN = T * N
    TN_pad = _round_up(TN, 128)

    # Cheap relayout: 't b n c -> b c (t n)'.  Lane-consecutive elements
    # stride by C in the source (near-contiguous).  No dtype upcast here; the
    # kernel casts after the VMEM load.
    logits = jnp.transpose(pred_is_referred, (1, 3, 0, 2)).reshape(B, C, TN)
    boxes = jnp.transpose(pred_boxes, (1, 3, 0, 2)).reshape(B, 4, TN)
    if TN_pad != TN:
        pad = ((0, 0), (0, 0), (0, TN_pad - TN))
        logits = jnp.pad(logits, pad)
        boxes = jnp.pad(boxes, pad)
    scale = orig_sample_sizes.astype(jnp.float32).reshape(B, 2, 1)   # [w, h]

    # --- block sizing -------------------------------------------------------
    # Cover as many batch rows per grid step as a modest VMEM budget allows;
    # split the lane axis only if a single row is still too big, or to feed
    # both TensorCores on v7x when there would otherwise be one grid step.
    budget = 8 * 1024 * 1024
    row_bytes = (C + 4 + 2 + 1 + 4) * TN_pad * 4 * 2   # in+out, double-buffered
    Bb = max(1, min(B, budget // max(row_bytes, 1)))
    while B % Bb:
        Bb -= 1
    TNb, lane_blocks = TN_pad, 1
    while Bb == 1 and row_bytes // lane_blocks > budget and TNb % 256 == 0:
        TNb //= 2
        lane_blocks *= 2

    n_tc = _tensorcores_per_chip()
    if (B // Bb) * lane_blocks < n_tc:
        if Bb > 1:
            Bb = max(1, Bb // n_tc)
            while B % Bb:
                Bb -= 1
        elif TNb % (128 * n_tc) == 0:
            TNb //= n_tc
            lane_blocks *= n_tc

    grid = (B // Bb, lane_blocks)

    kernel = functools.partial(_postprocess_kernel,
                               referred_sigmoid=referred_sigmoid,
                               num_classes=C)

    grid_spec = pltpu.PrefetchScalarGridSpec(
        num_scalar_prefetch=0,
        grid=grid,
        in_specs=[
            pl.BlockSpec((Bb, C, TNb), lambda i, j: (i, 0, j)),
            pl.BlockSpec((Bb, 4, TNb), lambda i, j: (i, 0, j)),
            pl.BlockSpec((Bb, 2, 1), lambda i, j: (i, 0, 0)),
        ],
        out_specs=[
            pl.BlockSpec((Bb, 1, TNb), lambda i, j: (i, 0, j)),
            pl.BlockSpec((Bb, 4, TNb), lambda i, j: (i, 0, j)),
        ],
    )

    scores_planes, boxes_planes = pl.pallas_call(
        kernel,
        out_shape=(jax.ShapeDtypeStruct((B, 1, TN_pad), jnp.float32),
                   jax.ShapeDtypeStruct((B, 4, TN_pad), jnp.float32)),
        grid_spec=grid_spec,
        compiler_params=pltpu.CompilerParams(
            dimension_semantics=("parallel", "parallel"),
            vmem_limit_bytes=32 * 1024 * 1024),
    )(logits, boxes, scale)

    # Small fixups back to the module's layout.  Scores fixup is tiny; the
    # boxes planes->interleaved transpose is the single unavoidable output
    # corner-turn.
    scores = jnp.transpose(scores_planes[:, 0, :TN].reshape(B, T, N), (0, 2, 1))
    boxes_xyxy = jnp.transpose(
        boxes_planes[:, :, :TN].reshape(B, 4, T, N), (0, 3, 2, 1))
    return scores, boxes_xyxy


def to_predictions(scores, boxes):
    """Build the module's list-of-dicts output host-side (single device_get,
    no per-image device slice dispatches)."""
    scores_h, boxes_h = jax.device_get((scores, boxes))
    return [{'scores': s, 'boxes': b} for s, b in zip(scores_h, boxes_h)]


def _reference(pred_is_referred, pred_boxes, orig_sample_sizes,
               referred_sigmoid=False):
    logits = jnp.transpose(pred_is_referred, (1, 2, 0, 3)).astype(jnp.float32)
    boxes = jnp.transpose(pred_boxes, (1, 2, 0, 3)).astype(jnp.float32)
    sizes = orig_sample_sizes.astype(jnp.float32)
    if referred_sigmoid:
        prob = jax.nn.sigmoid(logits)
    else:
        prob = jax.nn.softmax(logits, axis=-1)
    scores = prob[..., 1]
    cx, cy, w, h = (boxes[..., 0], boxes[..., 1], boxes[..., 2], boxes[..., 3])
    xyxy = jnp.stack([cx - 0.5 * w, cy - 0.5 * h,
                      cx + 0.5 * w, cy + 0.5 * h], axis=-1)
    scale = jnp.stack([sizes[:, 0], sizes[:, 1],
                       sizes[:, 0], sizes[:, 1]], axis=1)
    return scores, xyxy * scale[:, None, None, :]


if __name__ == "__main__":
    # TODO(synk): confirm upstream passes orig_sample_sizes as (img_w, img_h);
    # the module's `unbind(1)` order is assumed here (same as the reference).
    def check(T, B, N, C, referred_sigmoid, key):
        k1, k2 = jax.random.split(key)
        pred_is_referred = jax.random.normal(k1, (T, B, N, C), dtype=jnp.float32)
        pred_boxes = jax.nn.sigmoid(
            jax.random.normal(k2, (T, B, N, 4), dtype=jnp.float32))
        orig_sample_sizes = jnp.array([[640.0, 480.0], [320.0, 256.0]],
                                      dtype=jnp.float32)[:B]
        scores, boxes = base_post_process(pred_is_referred, pred_boxes,
                                          orig_sample_sizes,
                                          referred_sigmoid=referred_sigmoid)
        jax.block_until_ready((scores, boxes))
        ref_scores, ref_boxes = _reference(pred_is_referred, pred_boxes,
                                           orig_sample_sizes, referred_sigmoid)
        assert scores.shape == (B, N, T) and boxes.shape == (B, N, T, 4)
        assert jnp.allclose(scores, ref_scores, atol=5e-3, rtol=1e-4), "scores"
        assert jnp.allclose(boxes, ref_boxes, atol=1e-3, rtol=1e-5), "boxes"

    key = jax.random.PRNGKey(0)
    keys = jax.random.split(key, 3)
    # C=2 softmax path (TN = 128 exactly: fully lane-dense, no padding)
    check(T=8, B=2, N=16, C=2, referred_sigmoid=False, key=keys[0])
    # referred_sigmoid path
    check(T=8, B=2, N=16, C=2, referred_sigmoid=True, key=keys[1])
    # C>2 softmax path + lane padding (TN = 80 -> padded to 128)
    check(T=8, B=2, N=10, C=3, referred_sigmoid=False, key=keys[2])

    # Module-style per-image predictions, built host-side.
    k1, k2 = jax.random.split(keys[0])
    preds = to_predictions(*base_post_process(
        jax.random.normal(k1, (8, 2, 16, 2), dtype=jnp.float32),
        jax.nn.sigmoid(jax.random.normal(k2, (8, 2, 16, 4), dtype=jnp.float32)),
        jnp.array([[640.0, 480.0], [320.0, 256.0]], dtype=jnp.float32)))
    assert len(preds) == 2
    assert preds[0]['scores'].shape == (16, 8)
    assert preds[0]['boxes'].shape == (16, 8, 4)

    print("KERNEL_OK")
</pallas_src>

<mosaic_0001>
module attributes {stable_mosaic.version = 11 : i64} {
  func.func @_postprocess_kernel(%arg0: i32, %arg1: i32, %arg2: memref<2x2x128xf32, #tpu.memory_space<vmem>>, %arg3: memref<2x4x128xf32, #tpu.memory_space<vmem>>, %arg4: memref<2x2x1xf32, #tpu.memory_space<vmem>>, %arg5: memref<2x1x128xf32, #tpu.memory_space<vmem>>, %arg6: memref<2x4x128xf32, #tpu.memory_space<vmem>>) attributes {dimension_semantics = [#tpu.dimension_semantics<parallel>, #tpu.dimension_semantics<parallel>], iteration_bounds = array<i64: 1, 1>, scalar_prefetch = 0 : i64, scratch_operands = 0 : i64, tpu.core_type = #tpu.core_type<tc>, window_params = [{transform_indices = @transform_0, window_bounds = array<i64: 2, 2, 128>}, {transform_indices = @transform_1, window_bounds = array<i64: 2, 4, 128>}, {transform_indices = @transform_2, window_bounds = array<i64: 2, 2, 1>}, {transform_indices = @transform_3, window_bounds = array<i64: 2, 1, 128>}, {transform_indices = @transform_4, window_bounds = array<i64: 2, 4, 128>}]} {
    %c0 = arith.constant 0 : index
    %c0_0 = arith.constant 0 : index
    %c0_1 = arith.constant 0 : index
    %0 = vector.load %arg2[%c0, %c0_0, %c0_1] : memref<2x2x128xf32, #tpu.memory_space<vmem>>, vector<2x2x128xf32>
    %1 = vector.extract_strided_slice %0 {offsets = [0, 0, 0], sizes = [2, 1, 128], strides = [1, 1, 1]} : vector<2x2x128xf32> to vector<2x1x128xf32>
    %2 = vector.extract_strided_slice %0 {offsets = [0, 1, 0], sizes = [2, 1, 128], strides = [1, 1, 1]} : vector<2x2x128xf32> to vector<2x1x128xf32>
    %3 = arith.subf %1, %2 : vector<2x1x128xf32>
    %4 = math.exp %3 : vector<2x1x128xf32>
    %cst = arith.constant 1.000000e+00 : f32
    %5 = vector.broadcast %cst : f32 to vector<2x1x128xf32>
    %6 = arith.addf %5, %4 : vector<2x1x128xf32>
    %7 = tpu.reciprocal %6 {approx = true} : vector<2x1x128xf32> -> vector<2x1x128xf32>
    %c0_2 = arith.constant 0 : index
    %c0_3 = arith.constant 0 : index
    %c0_4 = arith.constant 0 : index
    %8 = vector.load %arg5[%c0_2, %c0_3, %c0_4] : memref<2x1x128xf32, #tpu.memory_space<vmem>>, vector<2x1x128xf32>
    tpu.vector_store %arg5[%c0_2, %c0_3, %c0_4], %7 {strides = array<i32>} : memref<2x1x128xf32, #tpu.memory_space<vmem>>, vector<2x1x128xf32>,
    %c0_5 = arith.constant 0 : index
    %c0_6 = arith.constant 0 : index
    %c0_7 = arith.constant 0 : index
    %9 = vector.load %arg3[%c0_5, %c0_6, %c0_7] : memref<2x4x128xf32, #tpu.memory_space<vmem>>, vector<2x4x128xf32>
    %c0_8 = arith.constant 0 : index
    %c0_9 = arith.constant 0 : index
    %c0_10 = arith.constant 0 : index
    %10 = vector.load %arg4[%c0_8, %c0_9, %c0_10] : memref<2x2x1xf32, #tpu.memory_space<vmem>>, vector<2x2x1xf32>
    %11 = vector.extract_strided_slice %9 {offsets = [0, 0, 0], sizes = [2, 2, 128], strides = [1, 1, 1]} : vector<2x4x128xf32> to vector<2x2x128xf32>
    %12 = vector.extract_strided_slice %9 {offsets = [0, 2, 0], sizes = [2, 2, 128], strides = [1, 1, 1]} : vector<2x4x128xf32> to vector<2x2x128xf32>
    %cst_11 = arith.constant 5.000000e-01 : f32
    %13 = vector.broadcast %cst_11 : f32 to vector<2x2x128xf32>
    %14 = arith.mulf %12, %13 : vector<2x2x128xf32>
    %15 = arith.subf %11, %14 : vector<2x2x128xf32>
    %16 = vector.broadcast %10 : vector<2x2x1xf32> to vector<2x2x128xf32>
    %17 = arith.mulf %15, %16 : vector<2x2x128xf32>
    %c0_12 = arith.constant 0 : index
    %c0_13 = arith.constant 0 : index
    %c0_14 = arith.constant 0 : index
    %18 = vector.load %arg6[%c0_12, %c0_13, %c0_14] : memref<2x4x128xf32, #tpu.memory_space<vmem>>, vector<2x2x128xf32>
    tpu.vector_store %arg6[%c0_12, %c0_13, %c0_14], %17 {strides = array<i32>} : memref<2x4x128xf32, #tpu.memory_space<vmem>>, vector<2x2x128xf32>,
    %19 = arith.addf %11, %14 : vector<2x2x128xf32>
    %20 = vector.broadcast %10 : vector<2x2x1xf32> to vector<2x2x128xf32>
    %21 = arith.mulf %19, %20 : vector<2x2x128xf32>
    %c0_15 = arith.constant 0 : index
    %c2 = arith.constant 2 : index
    %c0_16 = arith.constant 0 : index
    %22 = vector.load %arg6[%c0_15, %c2, %c0_16] : memref<2x4x128xf32, #tpu.memory_space<vmem>>, vector<2x2x128xf32>
    tpu.vector_store %arg6[%c0_15, %c2, %c0_16], %21 {strides = array<i32>} : memref<2x4x128xf32, #tpu.memory_space<vmem>>, vector<2x2x128xf32>,
    return
  }
  func.func @transform_0(%arg0: i32, %arg1: i32) -> (i32, i32, i32) {
    %c0_i32 = arith.constant 0 : i32
    %c0_i32_0 = arith.constant 0 : i32
    return %arg0, %c0_i32, %arg1 : i32, i32, i32
  }
  func.func @transform_1(%arg0: i32, %arg1: i32) -> (i32, i32, i32) {
    %c0_i32 = arith.constant 0 : i32
    %c0_i32_0 = arith.constant 0 : i32
    return %arg0, %c0_i32, %arg1 : i32, i32, i32
  }
  func.func @transform_2(%arg0: i32, %arg1: i32) -> (i32, i32, i32) {
    %c0_i32 = arith.constant 0 : i32
    %c0_i32_0 = arith.constant 0 : i32
    %c0_i32_1 = arith.constant 0 : i32
    return %arg0, %c0_i32, %c0_i32_0 : i32, i32, i32
  }
  func.func @transform_3(%arg0: i32, %arg1: i32) -> (i32, i32, i32) {
    %c0_i32 = arith.constant 0 : i32
    %c0_i32_0 = arith.constant 0 : i32
    return %arg0, %c0_i32, %arg1 : i32, i32, i32
  }
  func.func @transform_4(%arg0: i32, %arg1: i32) -> (i32, i32, i32) {
    %c0_i32 = arith.constant 0 : i32
    %c0_i32_0 = arith.constant 0 : i32
    return %arg0, %c0_i32, %arg1 : i32, i32, i32
  }
}

</mosaic_0001>

<bundles_post_ra>
// kernel: squeeze.1
= control target key start
LH: loop header
LB: loop body
LE: loop exit
PB: predicated region body
PF: predicated region fallthrough
CT: control target
= control target key end

     0   :  { %s130_s0 = inlined_call_operand.vmem [shape: f32[2,128], index: 0, kind: input, shape index: {}]   ;;  %s131_s1 = inlined_call_operand.hbm [shape: f32[2,8,16], index: 1, kind: output, shape index: {}]  }
   0x1   :  { %v5_v0 = vld [vmem:[%s130_s0] sm:$0x3] }
   0x2   :  { %6 = vst [vmem:[#allocation2] sm:$0x3] %v5_v0 }
   0x3   :  { %2 = vsyncpa [#allocation1], 0  ;;  %s98_s0 = smov 112   ;;  %s99_s8 = smov 80   ;;  %vm8_vm0 = vcmask 130048  }
   0x4   :  { %s100_s9 = smov 48   ;;  %s101_s10 = smov 96  }
   0x5   :  { %s102_s11 = smov 64   ;;  %s103_s12 = smov 32  }
   0x6   :  { %s104_s13 = smov 16   ;;  %s105_s14 = smov [#allocation0]  }
   0x7   :  { %s55_s15 = sshll.u32 %s105_s14, 4  ;;  %s57_s1 = sshll.u32 %s131_s1, 4  ;;  %s56_s15 = int_to_ptr.vmem [resolvable:$true] %s55_s15  ;;  %s58_s1 = int_to_ptr.hbm [resolvable:$true] %s57_s1 }
   0x9   :  { %v10_v1 = vld [vmem:[#allocation2] sm:$0x3]  }
   0xa   :  { %v22_v2 = vld [vmem:[#allocation2] sm:$0x3]   ;;  %11 = vrot.lane.b32.xlu0 %v10_v1, %s98_s0 }
   0xb   :  { %23 = vrot.lane.b32.xlu1 %v22_v2, %s99_s8  ;;  %v34_v3 = vld [vmem:[#allocation2] sm:$0x3]  }
   0xc   :  { %35 = vrot.lane.b32.xlu2 %v34_v3, %s100_s9  ;;  %v16_v4 = vld [vmem:[#allocation2] sm:$0x3]  }
   0xd   :  { %v28_v5 = vld [vmem:[#allocation2] sm:$0x3]  }
   0xe   :  { %v40_v6 = vld [vmem:[#allocation2] sm:$0x3]  }
   0xf   :  { %v46_v7 = vld [vmem:[#allocation2] sm:$0x3]  }
  0x10   :  { %v7_v9 = vld [vmem:[#allocation2] sm:$0x3]  }
  0x11   :  { %9 = vst.msk [vmem:[#allocation0] ss:$8 sm:$0x3] %vm8_vm0, %v7_v9  }
  0x12   :  { %17 = vrot.lane.b32.xlu0 %v16_v4, %s101_s10 }
  0x13   :  { %29 = vrot.lane.b32.xlu1 %v28_v5, %s102_s11 }
  0x14   :  { %41 = vrot.lane.b32.xlu2 %v40_v6, %s103_s12 }
  0x1a   :  { %47 = vrot.lane.b32.xlu0 %v46_v7, %s104_s13 }
  0x66   :  { %v36_v8 = vpop.permute.xlu2 %35  }
  0x67   :  { %39 = vst.msk [vmem:[#allocation0 + $0x5] ss:$8 sm:$0x3] %vm8_vm0, %v36_v8  }
  0x6e   :  { %v42_v10 = vpop.permute.xlu2 %41  }
  0x6f   :  { %45 = vst.msk [vmem:[#allocation0 + $0x6] ss:$8 sm:$0x3] %vm8_vm0, %v42_v10  }
  0x7c   :  { %v12_v11 = vpop.permute.xlu0 %11  }
  0x7d   :  { %v24_v12 = vpop.permute.xlu1 %23   ;;  %15 = vst.msk [vmem:[#allocation0 + $0x1] ss:$8 sm:$0x3] %vm8_vm0, %v12_v11  }
  0x7e   :  { %27 = vst.msk [vmem:[#allocation0 + $0x3] ss:$8 sm:$0x3] %vm8_vm0, %v24_v12  }
  0x84   :  { %v18_v13 = vpop.permute.xlu0 %17  }
  0x85   :  { %v30_v14 = vpop.permute.xlu1 %29   ;;  %21 = vst.msk [vmem:[#allocation0 + $0x2] ss:$8 sm:$0x3] %vm8_vm0, %v18_v13  }
  0x86   :  { %33 = vst.msk [vmem:[#allocation0 + $0x4] ss:$8 sm:$0x3] %vm8_vm0, %v30_v14  }
  0x8c   :  { %v48_v15 = vpop.permute.xlu0 %47  }
  0x8d   :  { %51 = vst.msk [vmem:[#allocation0 + $0x7] ss:$8 sm:$0x3] %vm8_vm0, %v48_v15  }
  0x8e   :  { %60 = dma.vmem_to_hbm [thread:$0]  %s56_s15, 256, %s58_s1, [#allocation1]  }
  0x8f   :  { %96 = dma.done.wait [#allocation1], 256  }
  0x90   :  { %97 = vsyncadd [#allocation1], 4294967040 }
  0x91   :  { %63 = vsyncpa [#allocation1], 1 }

// kernel: base_post_process.1
= control target key start
LH: loop header
LB: loop body
LE: loop exit
PB: predicated region body
PF: predicated region fallthrough
CT: control target
= control target key end

     0   :  { %v88_v0 = vmov 0   ;;  %s150_s2 = inlined_call_operand.vmem [shape: f32[2,2,1], index: 2, kind: input, shape index: {}]   ;;  %s151_s0 = inlined_call_operand.vmem [shape: f32[2,2,128], index: 0, kind: input, shape index: {}]   ;;  %s152_s3 = inlined_call_operand.vmem [shape: f32[2,1,128], index: 3, kind: output, shape index: {0}]   ;;  %s153_s1 = inlined_call_operand.vmem [shape: f32[2,4,128], index: 1, kind: input, shape index: {}]   ;;  %s154_s4 = inlined_call_operand.vmem [shape: f32[2,4,128], index: 4, kind: output, shape index: {1}]  }
   0x1   :  { %79 = vset.pattern.permute.xlu0 %v88_v0  ;;  %v38_v1 = vld [vmem:[%s150_s2] sm:$0x3]  ;;  %v39_v2 = vld [vmem:[%s150_s2 + $0x2] sm:$0x3]  ;;  %v37_v20 = vld [vmem:[%s153_s1 + $0x4] sm:$0xf] }
   0x2   :  { %52 = vperm.xlu0 %79, %v38_v1   ;;  %v16_v3 = vld [vmem:[%s151_s0] sm:$0x3]  ;;  %v17_v4 = vld [vmem:[%s151_s0 + $0x2] sm:$0x3]  ;;  %v41_v23 = vmul.f32 0.5, %v37_v20 }
   0x3   :  { %v20_v5 = vrot.slane %v16_v3, 1  ;;  %v21_v6 = vrot.slane %v17_v4, 1  ;;  %v36_v17 = vld [vmem:[%s153_s1] sm:$0xf] }
   0x4   :  { %v40_v18 = vmul.f32 0.5, %v36_v17  ;;  %v45_v27 = vrot.slane %v41_v23, 2 }
   0x5   :  { %v24_v7 = vsub.f32 %v16_v3, %v20_v5  ;;  %v25_v8 = vsub.f32 %v17_v4, %v21_v6 }
   0x6   :  { %v44_v19 = vrot.slane %v40_v18, 2  ;;  %v49_v28 = vsub.f32 %v37_v20, %v45_v27  ;;  %v65_v29 = vadd.f32 %v45_v27, %v37_v20 }
   0x7   :  { %v26_v9 = vmul.f32 1.442695, %v24_v7  ;;  %v28_v10 = vmul.f32 1.442695, %v25_v8 }
   0x8   :  { %v48_v21 = vsub.f32 %v36_v17, %v44_v19  ;;  %v64_v22 = vadd.f32 %v44_v19, %v36_v17 }
   0x9   :  { %80 = vpow2.f32 %v26_v9 }
   0xa   :  { %57 = vperm.xlu0 %79, %v39_v2   ;;  %82 = vpow2.f32 %v28_v10 }
   0xf   :  { %v81_v11 = vpop.eup %80 }
  0x10   :  { %v83_v12 = vpop.eup %82  ;;  %v30_v13 = vadd.f32 1.0, %v81_v11 }
  0x11   :  { %v31_v14 = vadd.f32 1.0, %v83_v12 }
  0x12   :  { %84 = vrcp.f32 %v30_v13 }
  0x13   :  { %86 = vrcp.f32 %v31_v14 }
  0x18   :  { %v85_v15 = vpop.eup %84 }
  0x19   :  { %v87_v16 = vpop.eup %86  ;;  %34 = vst [vmem:[%s152_s3] sm:$0x1] %v85_v15 }
  0x1a   :  { %35 = vst [vmem:[%s152_s3 + $0x1] sm:$0x1] %v87_v16 }
  0x74   :  { %v53_v24 = vpop.permute.xlu0 %52 }
  0x75   :  { %v60_v25 = vmul.f32 %v53_v24, %v48_v21  ;;  %v66_v26 = vmul.f32 %v64_v22, %v53_v24 }
  0x77   :  { %62 = vst [vmem:[%s154_s4] sm:$0x3] %v60_v25 }
  0x78   :  { %68 = vst [vmem:[%s154_s4 + $0x2] sm:$0x3] %v66_v26 }
  0x7c   :  { %v58_v30 = vpop.permute.xlu0 %57 }
  0x7d   :  { %v61_v31 = vmul.f32 %v58_v30, %v49_v28  ;;  %v67_v32 = vmul.f32 %v65_v29, %v58_v30 }
  0x7f   :  { %63 = vst [vmem:[%s154_s4 + $0x4] sm:$0x3] %v61_v31 }
  0x80   :  { %69 = vst [vmem:[%s154_s4 + $0x6] sm:$0x3] %v67_v32 }

</bundles_post_ra>
